<compile_context>
chip_gen: v6e
topology: v6e:2x2x1
jax: 0.10.0
libtpu: 0.0.40
codegen_flags: <defaults>
</compile_context>

<pallas_src>
import functools

import jax
import jax.numpy as jnp
from jax.experimental import pallas as pl
from jax.experimental.pallas import tpu as pltpu

# ---------------- hyper-params (small analog of the original module) ---------
IN_CHANNELS = 4
PATCH = 4
VOL = 16                                  # D = H = W
EMBED_DIM = 32
BATCH = 2
NUM_PATCHES = (VOL // PATCH) ** 3         # 64
SEQ = NUM_PATCHES + 1                     # 65 (cls token appended LAST, per reference)


# ---------------- fused Pallas kernel ----------------------------------------
def _patch_embed_kernel(p_ref, w_ref, aux_ref, o_ref, *, batch, num_patches, seq):
    """Fused patch embedding, transposed (lane-dense) layout.

    p_ref  : (K, B*P)  bf16 patches, columns ordered b*P + patch_idx
    w_ref  : (E, K)    bf16 conv weight (native (E, C*pd*ph*pw) order, no .T)
    aux_ref: (E, 2+S)  f32 packed small params:
                       col 0 = conv bias, col 1 = cls token, cols 2: = pos^T
    o_ref  : (E, B*S)  f32 output, columns ordered b*S + s (cls last per batch)
    """
    P, S = num_patches, seq

    # One MXU matmul for every patch of every batch element; f32 accumulation,
    # result minor dim = B*P = 128 lanes (dense, unmasked stores).
    emb = jnp.dot(w_ref[...], p_ref[...], preferred_element_type=jnp.float32)
    emb = emb + aux_ref[:, 0:1]                            # + conv bias   (E, B*P)

    pos_patch = aux_ref[:, 2:2 + P]                        # (E, P) pos for patch tokens
    cls_col = aux_ref[:, 1:2] + aux_ref[:, 2 + P:2 + S]    # (E, 1) cls + its pos

    # Assemble (E, B*S) = [emb_b0 + pos | cls | emb_b1 + pos | cls | ...] with a
    # single whole-block store.  Tiny static unroll over batch (B = 2).
    pieces = []
    for b in range(batch):
        pieces.append(emb[:, b * P:(b + 1) * P] + pos_patch)
        pieces.append(cls_col)
    o_ref[...] = jnp.concatenate(pieces, axis=-1)
    # TODO(synk): Dropout has no RNG path here; inference mode -> identity.


# ---------------- wrapper ------------------------------------------------------
@jax.jit
def patch_embedding_forward(x, params):
    B, C, D, H, W = x.shape
    p = PATCH
    Dp, Hp, Wp = D // p, H // p, W // p
    P = Dp * Hp * Wp
    S = P + 1
    E = EMBED_DIM
    K = C * p * p * p

    # Conv3d(kernel=stride=patch) == per-patch matmul.  Build the TRANSPOSED
    # patch matrix (K, B*P): rows in (C, pd, ph, pw) order to match the conv
    # weight flatten order, columns b-major then (dp, hp, wp) row-major.
    # allow_input_fusion lets XLA fuse this reshape/transpose/cast into the
    # pallas_call input instead of materializing a second copy of x in HBM.
    patches_t = x.reshape(B, C, Dp, p, Hp, p, Wp, p)
    patches_t = patches_t.transpose(1, 3, 5, 7, 0, 2, 4, 6).reshape(K, B * P)
    patches_t = patches_t.astype(jnp.bfloat16)

    w = params["conv_w"].reshape(E, K).astype(jnp.bfloat16)   # (E, K), no transpose

    # Pack the tiny f32 params into one (E, 2+S) operand -> a single DMA.
    aux = jnp.concatenate(
        [params["conv_b"].reshape(E, 1),
         params["cls"].reshape(1, E).T,
         params["pos"].reshape(S, E).T],
        axis=1,
    ).astype(jnp.float32)

    kernel = functools.partial(
        _patch_embed_kernel, batch=B, num_patches=P, seq=S)

    out_t = pl.pallas_call(
        kernel,
        out_shape=jax.ShapeDtypeStruct((E, B * S), jnp.float32),
        # No grid: single invocation, all operands resident in VMEM (~130 KiB).
        in_specs=[
            pl.BlockSpec(memory_space=pltpu.MemorySpace.VMEM),
            pl.BlockSpec(memory_space=pltpu.MemorySpace.VMEM),
            pl.BlockSpec(memory_space=pltpu.MemorySpace.VMEM),
        ],
        out_specs=pl.BlockSpec(memory_space=pltpu.MemorySpace.VMEM),
        compiler_params=pltpu.CompilerParams(
            allow_input_fusion=[True, False, False]),
    )(patches_t, w, aux)

    # Undo the lane-dense layout: (E, B*S) -> (B, S, E).  ~16 KiB of layout
    # plumbing under jit; all compute already happened inside the kernel.
    return out_t.reshape(E, B, S).transpose(1, 2, 0)


# ---------------- pure-JAX reference (f32) for a sanity check -------------------
def _reference(x, params):
    B, C, D, H, W = x.shape
    p = PATCH
    Dp, Hp, Wp = D // p, H // p, W // p
    P = Dp * Hp * Wp
    E = EMBED_DIM
    K = C * p * p * p
    patches = x.reshape(B, C, Dp, p, Hp, p, Wp, p)
    patches = patches.transpose(0, 2, 4, 6, 1, 3, 5, 7).reshape(B, P, K)
    emb = patches @ params["conv_w"].reshape(E, K).T + params["conv_b"]
    cls = jnp.broadcast_to(params["cls"], (B, 1, E))
    return jnp.concatenate([emb, cls], axis=1) + params["pos"]


# ---------------- deterministic parameter init ---------------------------------
def init_params(key):
    def nrm(k, shape, scale=0.02):
        return scale * jax.random.normal(k, shape, jnp.float32)

    k1, k2, k3, k4 = jax.random.split(key, 4)
    E = EMBED_DIM
    return {
        "conv_w": nrm(k1, (E, IN_CHANNELS, PATCH, PATCH, PATCH)),
        "conv_b": nrm(k2, (E,)),
        "cls": nrm(k3, (1, 1, E)),
        "pos": nrm(k4, (1, SEQ, E)),
    }


if __name__ == "__main__":
    key = jax.random.PRNGKey(0)
    kx, kp = jax.random.split(key)
    x = jax.random.normal(kx, (BATCH, IN_CHANNELS, VOL, VOL, VOL), jnp.float32)
    params = init_params(kp)

    out = patch_embedding_forward(x, params)
    out = jax.block_until_ready(out)
    assert out.shape == (BATCH, SEQ, EMBED_DIM), out.shape
    assert bool(jnp.all(jnp.isfinite(out)))

    # Loose tolerance: kernel uses bf16 MXU operands with f32 accumulation.
    ref = _reference(x, params)
    max_err = float(jnp.max(jnp.abs(out - ref)))
    assert max_err < 5e-2, f"max abs error vs reference: {max_err}"

    print("KERNEL_OK")
</pallas_src>

<mosaic_0001>
module attributes {stable_mosaic.version = 11 : i64} {
  func.func @_patch_embed_kernel(%arg0: memref<256x128xbf16, #tpu.memory_space<vmem>>, %arg1: memref<32x256xbf16, #tpu.memory_space<vmem>>, %arg2: memref<32x67xf32, #tpu.memory_space<vmem>>, %arg3: memref<32x130xf32, #tpu.memory_space<vmem>>) attributes {dimension_semantics = [], scalar_prefetch = 0 : i64, scratch_operands = 0 : i64, tpu.core_type = #tpu.core_type<tc>} {
    %c0 = arith.constant 0 : index
    %c0_0 = arith.constant 0 : index
    %0 = vector.load %arg1[%c0, %c0_0] : memref<32x256xbf16, #tpu.memory_space<vmem>>, vector<32x256xbf16>
    %c0_1 = arith.constant 0 : index
    %c0_2 = arith.constant 0 : index
    %1 = vector.load %arg0[%c0_1, %c0_2] : memref<256x128xbf16, #tpu.memory_space<vmem>>, vector<256x128xbf16>
    %cst = arith.constant dense<0.000000e+00> : vector<32x128xf32>
    %2 = tpu.matmul %0, %1, %cst {dimension_numbers = #tpu.dot_dimension_numbers<[1], [0], [0], [1], [0, 0, 1, 1], [], []>} : vector<32x256xbf16>, vector<256x128xbf16>, vector<32x128xf32> -> vector<32x128xf32>
    %c0_3 = arith.constant 0 : index
    %c0_4 = arith.constant 0 : index
    %3 = vector.load %arg2[%c0_3, %c0_4] : memref<32x67xf32, #tpu.memory_space<vmem>>, vector<32x1xf32>
    %4 = vector.broadcast %3 : vector<32x1xf32> to vector<32x128xf32>
    %5 = arith.addf %2, %4 : vector<32x128xf32>
    %c0_5 = arith.constant 0 : index
    %c2 = arith.constant 2 : index
    %6 = vector.load %arg2[%c0_5, %c2] : memref<32x67xf32, #tpu.memory_space<vmem>>, vector<32x64xf32>
    %c0_6 = arith.constant 0 : index
    %c1 = arith.constant 1 : index
    %7 = vector.load %arg2[%c0_6, %c1] : memref<32x67xf32, #tpu.memory_space<vmem>>, vector<32x1xf32>
    %c0_7 = arith.constant 0 : index
    %c66 = arith.constant 66 : index
    %8 = vector.load %arg2[%c0_7, %c66] : memref<32x67xf32, #tpu.memory_space<vmem>>, vector<32x1xf32>
    %9 = arith.addf %7, %8 : vector<32x1xf32>
    %10 = vector.extract_strided_slice %5 {offsets = [0, 0], sizes = [32, 64], strides = [1, 1]} : vector<32x128xf32> to vector<32x64xf32>
    %11 = arith.addf %10, %6 : vector<32x64xf32>
    %12 = vector.extract_strided_slice %5 {offsets = [0, 64], sizes = [32, 64], strides = [1, 1]} : vector<32x128xf32> to vector<32x64xf32>
    %13 = arith.addf %12, %6 : vector<32x64xf32>
    %14 = tpu.concatenate %11, %9, %13, %9 in 1 : vector<32x64xf32>, vector<32x1xf32>, vector<32x64xf32>, vector<32x1xf32> -> vector<32x130xf32>
    %c0_8 = arith.constant 0 : index
    %c0_9 = arith.constant 0 : index
    %15 = vector.load %arg3[%c0_8, %c0_9] : memref<32x130xf32, #tpu.memory_space<vmem>>, vector<32x130xf32>
    tpu.vector_store %arg3[%c0_8, %c0_9], %14 {strides = array<i32>} : memref<32x130xf32, #tpu.memory_space<vmem>>, vector<32x130xf32>,
    return
  }
}

</mosaic_0001>

<bundles_post_ra>
// kernel: patch_embedding_forward.1
= control target key start
LH: loop header
LB: loop body
LE: loop exit
PB: predicated region body
PF: predicated region fallthrough
CT: control target
= control target key end

     0   :  { %v441_v0 = vmov 0   ;;  %s442_s6 = smov 63   ;;  %s443_s15 = smov 62   ;;  %vm320_vm0 = vcmask 523264   ;;  %vm325_vm1 = vcmask 531456   ;;  %vm330_vm2 = vcmask 7168   ;;  %s626_s2 = inlined_call_operand.vmem [shape: f32[32,67], index: 2, kind: input, shape index: {}]   ;;  %s627_s0 = inlined_call_operand.vmem [shape: bf16[256,128], index: 0, kind: input, shape index: {}]   ;;  %s628_s1 = inlined_call_operand.vmem [shape: bf16[32,256], index: 1, kind: input, shape index: {}]   ;;  %s629_s3 = inlined_call_operand.vmem [shape: f32[32,130], index: 3, kind: output, shape index: {}]  }
   0x1   :  { %418 = vset.pattern.permute.xlu1 %v441_v0  ;;  %417 = vset.pattern.permute.xlu0 %v441_v0  ;;  %v469_v1 = vld [vmem:[%s626_s2 + $0x10] sm:$0xff]  ;;  %v474_v2 = vld [vmem:[%s626_s2] sm:$0xff]  ;;  %v419_v3 = vld [vmem:[%s627_s0 + $0x78] sm:$0xff]   ;;  %s444_s28 = smov 126   ;;  %vm336_vm3 = vcmask 15360  }
   0x2   :  { %67 = vperm.xlu1 %418, %v469_v1   ;;  %57 = vperm.xlu0 %417, %v474_v2   ;;  %v420_v4 = vld [vmem:[%s627_s0 + $0x38] sm:$0xff]   ;;  %v492_v6 = vld [vmem:[%s626_s2 + $0x8] sm:$0xff]  ;;  %v421_v7 = vld [vmem:[%s627_s0 + $0x70] sm:$0xff]  }
   0x3   :  { %v487_v5 = vld [vmem:[%s626_s2 + $0x18] sm:$0xff]  ;;  %368 = vmatprep.subr.bf16.mxu0 %v419_v3  ;;  %396 = vmatprep.subr.bf16.mxu1 %v419_v3  ;;  %v422_v8 = vld [vmem:[%s627_s0 + $0x30] sm:$0xff]   ;;  %v423_v9 = vld [vmem:[%s627_s0 + $0x68] sm:$0xff]  }
   0x4   :  { %369 = vmatpush3.bf16.msra.mxu0 %v420_v4  ;;  %404 = vmatpush3.bf16.msra.mxu1 %v420_v4  ;;  %v424_v10 = vld [vmem:[%s627_s0 + $0x28] sm:$0xff]   ;;  %v425_v11 = vld [vmem:[%s627_s0 + $0x60] sm:$0xff]   ;;  %v427_v13 = vld [vmem:[%s627_s0 + $0x58] sm:$0xff]  }
   0x5   :  { %370 = vmatprep.subr.bf16.mxu0 %v421_v7  ;;  %397 = vmatprep.subr.bf16.mxu1 %v421_v7  ;;  %v426_v12 = vld [vmem:[%s627_s0 + $0x20] sm:$0xff]   ;;  %v428_v14 = vld [vmem:[%s627_s0 + $0x18] sm:$0xff]   ;;  %v429_v15 = vld [vmem:[%s627_s0 + $0x50] sm:$0xff]  }
   0x6   :  { %72 = vperm.xlu1 %418, %v487_v5   ;;  %62 = vperm.xlu0 %417, %v492_v6   ;;  %v437_v16 = vld [vmem:[%s628_s1 + $0x4] ss:$8 sps:$4 sm:$0xff]   ;;  %v430_v17 = vld [vmem:[%s627_s0 + $0x10] sm:$0xff]   ;;  %v435_v23 = vld [vmem:[%s628_s1] ss:$8 sps:$4 sm:$0xff]  }
   0x7   :  { %v440_v18 = vld [vmem:[%s628_s1 + $0x14] ss:$8 sps:$4 sm:$0xff]   ;;  %v431_v19 = vld [vmem:[%s627_s0 + $0x48] sm:$0xff]   ;;  %223 = vmatprep.mubr.bf16.mxu0 %v437_v16  ;;  %v433_v21 = vld [vmem:[%s627_s0 + $0x40] sm:$0xff]  }
   0x8   :  { %371 = vmatpush3.bf16.msra.mxu0 %v422_v8  ;;  %405 = vmatpush3.bf16.msra.mxu1 %v422_v8  ;;  %v432_v20 = vld [vmem:[%s627_s0 + $0x8] sm:$0xff]   ;;  %v434_v22 = vld [vmem:[%s627_s0] sm:$0xff]   ;;  %v438_v24 = vld [vmem:[%s628_s1 + $0x10] ss:$8 sps:$4 sm:$0xff]   ;;  %s445_s0 = smov 1  }
   0x9   :  { %372 = vmatprep.subr.bf16.mxu0 %v423_v9  ;;  %398 = vmatprep.subr.bf16.mxu1 %v423_v9 }
   0xa   :  { %242 = vrot.lane.b32.xlu1 %v492_v6, %s442_s6  ;;  %240 = vrot.lane.b32.xlu0 %v474_v2, %s442_s6 }
   0xb   :  { %231 = vmatprep.mubr.bf16.mxu1 %v440_v18 }
   0xc   :  { %373 = vmatpush3.bf16.msra.mxu0 %v424_v10  ;;  %406 = vmatpush3.bf16.msra.mxu1 %v424_v10 }
   0xd   :  { %374 = vmatprep.subr.bf16.mxu0 %v425_v11  ;;  %399 = vmatprep.subr.bf16.mxu1 %v425_v11 }
   0xe   :  { %246 = vrot.lane.b32.xlu1 %v487_v5, %s442_s6  ;;  %244 = vrot.lane.b32.xlu0 %v469_v1, %s442_s6 }
  0x10   :  { %375 = vmatpush3.bf16.msra.mxu0 %v426_v12  ;;  %407 = vmatpush3.bf16.msra.mxu1 %v426_v12 }
  0x11   :  { %376 = vmatprep.subr.bf16.mxu0 %v427_v13  ;;  %400 = vmatprep.subr.bf16.mxu1 %v427_v13 }
  0x12   :  { %272 = vrot.lane.b32.xlu0 %v474_v2, %s443_s15  ;;  %274 = vrot.lane.b32.xlu1 %v492_v6, %s443_s15 }
  0x14   :  { %377 = vmatpush3.bf16.msra.mxu0 %v428_v14  ;;  %408 = vmatpush3.bf16.msra.mxu1 %v428_v14 }
  0x15   :  { %378 = vmatprep.subr.bf16.mxu0 %v429_v15  ;;  %401 = vmatprep.subr.bf16.mxu1 %v429_v15 }
  0x16   :  { %276 = vrot.lane.b32.xlu0 %v469_v1, %s443_s15  ;;  %278 = vrot.lane.b32.xlu1 %v487_v5, %s443_s15 }
  0x18   :  { %379 = vmatpush3.bf16.msra.mxu0 %v430_v17  ;;  %409 = vmatpush3.bf16.msra.mxu1 %v430_v17 }
  0x19   :  { %380 = vmatprep.subr.bf16.mxu0 %v431_v19  ;;  %402 = vmatprep.subr.bf16.mxu1 %v431_v19 }
  0x1a   :  { %256 = vrot.lane.b32.xlu0 %v474_v2, %s444_s28  ;;  %258 = vrot.lane.b32.xlu1 %v492_v6, %s444_s28 }
  0x1c   :  { %381 = vmatpush3.bf16.msra.mxu0 %v432_v20  ;;  %410 = vmatpush3.bf16.msra.mxu1 %v432_v20 }
  0x1d   :  { %382 = vmatprep.subr.bf16.mxu0 %v433_v21  ;;  %403 = vmatprep.subr.bf16.mxu1 %v433_v21 }
  0x1e   :  { %260 = vrot.lane.b32.xlu0 %v469_v1, %s444_s28  ;;  %262 = vrot.lane.b32.xlu1 %v487_v5, %s444_s28 }
  0x20   :  { %383 = vmatpush3.bf16.msra.mxu0 %v434_v22  ;;  %411 = vmatpush3.bf16.msra.mxu1 %v434_v22 }
  0x23   :  { %224 = vmatmul.mubr.bf16.vlgmr.msra.gmra.mxu0 %v435_v23  ;;  %232 = vmatmul.mubr.bf16.vlgmr.msra.gmra.mxu1 %v438_v24 }
  0x7d   :  { %v68_v25 = vpop.permute.xlu1 %67  ;;  %v58_v26 = vpop.permute.xlu0 %57 }
  0x81   :  { %v73_v27 = vpop.permute.xlu1 %72  ;;  %v63_v28 = vpop.permute.xlu0 %62 }
  0x85   :  { %v243_v29 = vpop.permute.xlu1 %242  ;;  %v241_v30 = vpop.permute.xlu0 %240 }
  0x86   :  { %v567_v31 = vadd.f32 %v243_v29, %v492_v6  ;;  %v252_v32 = vadd.f32 %v241_v30, %v474_v2 }
  0x88   :  { %294 = vrot.lane.b32.xlu1 %v567_v31, %s442_s6  ;;  %292 = vrot.lane.b32.xlu0 %v252_v32, %s442_s6 }
  0x89   :  { %v247_v33 = vpop.permute.xlu1 %246  ;;  %v245_v34 = vpop.permute.xlu0 %244 }
  0x8a   :  { %v574_v35 = vadd.f32 %v247_v33, %v487_v5  ;;  %v577_v36 = vadd.f32 %v245_v34, %v469_v1 }
  0x8c   :  { %298 = vrot.lane.b32.xlu1 %v574_v35, %s442_s6  ;;  %296 = vrot.lane.b32.xlu0 %v577_v36, %s442_s6 }
  0x8d   :  { %v273_v45 = vpop.permute.xlu0 %272  ;;  %v275_v51 = vpop.permute.xlu1 %274 }
  0x91   :  { %v277_v55 = vpop.permute.xlu0 %276  ;;  %v279_v59 = vpop.permute.xlu1 %278 }
  0x95   :  { %v257_v61 = vpop.permute.xlu0 %256  ;;  %v259_v62 = vpop.permute.xlu1 %258 }
  0x99   :  { %v261_v63 = vpop.permute.xlu0 %260  ;;  %v263_v0 = vpop.permute.xlu1 %262 }
  0xe3   :  { %v384_v37 = vpop.f32.mrf.mxu0  ;;  %v390_v38 = vpop.f32.mrf.mxu1 }
  0xe5   :  { %v385_v39 = vpop.f32.mrf.mxu0  ;;  %v391_v40 = vpop.f32.mrf.mxu1 }
  0xe6   :  { %v386_v41 = vadd.f32 %v385_v39, %v384_v37  ;;  %v392_v42 = vadd.f32 %v391_v40, %v390_v38 }
  0xe7   :  { %v387_v43 = vpop.f32.mrf.mxu0  ;;  %v393_v44 = vpop.f32.mrf.mxu1 }
  0xe8   :  { %v226_v46 = vadd.f32 %v386_v41, %v58_v26  ;;  %v234_v52 = vadd.f32 %v392_v42, %v68_v25 }
  0xe9   :  { %v388_v47 = vpop.f32.mrf.mxu0  ;;  %v394_v48 = vpop.f32.mrf.mxu1 }
  0xea   :  { %v389_v49 = vadd.f32 %v388_v47, %v387_v43  ;;  %v395_v50 = vadd.f32 %v394_v48, %v393_v44  ;;  %v284_v53 = vadd.f32 %v273_v45, %v226_v46  ;;  %v286_v58 = vadd.f32 %v277_v55, %v234_v52 }
  0xeb   :  { %v268_v4 = vadd.f32 %v257_v61, %v226_v46  ;;  %v270_v11 = vadd.f32 %v261_v63, %v234_v52 }
  0xec   :  { %v229_v54 = vadd.f32 %v389_v49, %v63_v28  ;;  %308 = vrot.lane.b32.xlu0 %v284_v53, %s445_s0  ;;  %v237_v56 = vadd.f32 %v395_v50, %v73_v27 }
  0xee   :  { %v285_v57 = vadd.f32 %v275_v51, %v229_v54  ;;  %v287_v60 = vadd.f32 %v279_v59, %v237_v56  ;;  %v269_v8 = vadd.f32 %v259_v62, %v229_v54  ;;  %v271_v18 = vadd.f32 %v263_v0, %v237_v56 }
  0xf0   :  { %310 = vrot.lane.b32.xlu1 %v285_v57, %s445_s0  ;;  %312 = vrot.lane.b32.xlu0 %v286_v58, %s445_s0 }
  0xf4   :  { %314 = vrot.lane.b32.xlu1 %v287_v60, %s445_s0 }
  0xfa   :  { %v293_v1 = vpop.permute.xlu0 %292  ;;  %v295_v2 = vpop.permute.xlu1 %294 }
  0xfb   :  { %v321_v6 = vsel %vm320_vm0, %v268_v4, %v293_v1  ;;  %v322_v12 = vsel %vm320_vm0, %v269_v8, %v295_v2 }
  0xfe   :  { %v297_v3 = vpop.permute.xlu0 %296  ;;  %v299_v5 = vpop.permute.xlu1 %298 }
  0xff   :  { %v323_v14 = vsel %vm320_vm0, %v270_v11, %v297_v3  ;;  %v324_v21 = vsel %vm320_vm0, %v271_v18, %v299_v5 }
 0x15e   :  { %v309_v7 = vpop.permute.xlu0 %308 }
 0x15f   :  { %v326_v9 = vsel %vm325_vm1, %v321_v6, %v309_v7  ;;  %v331_v10 = vsel %vm330_vm2, %v309_v7, %v252_v32 }
 0x160   :  { %335 = vst [vmem:[%s629_s3] sm:$0xff] %v326_v9  ;;  %337 = vst.msk [vmem:[%s629_s3 + $0x8] sm:$0xff] %vm336_vm3, %v331_v10 }
 0x162   :  { %v311_v13 = vpop.permute.xlu1 %310  ;;  %v313_v17 = vpop.permute.xlu0 %312 }
 0x163   :  { %v327_v15 = vsel %vm325_vm1, %v322_v12, %v311_v13  ;;  %v332_v16 = vsel %vm330_vm2, %v311_v13, %v567_v31  ;;  %v328_v19 = vsel %vm325_vm1, %v323_v14, %v313_v17  ;;  %v333_v20 = vsel %vm330_vm2, %v313_v17, %v577_v36 }
 0x164   :  { %338 = vst [vmem:[%s629_s3 + $0x10] sm:$0xff] %v327_v15  ;;  %339 = vst.msk [vmem:[%s629_s3 + $0x18] sm:$0xff] %vm336_vm3, %v332_v16 }
 0x165   :  { %340 = vst [vmem:[%s629_s3 + $0x20] sm:$0xff] %v328_v19  ;;  %341 = vst.msk [vmem:[%s629_s3 + $0x28] sm:$0xff] %vm336_vm3, %v333_v20 }
 0x166   :  { %v315_v22 = vpop.permute.xlu1 %314 }
 0x167   :  { %v329_v23 = vsel %vm325_vm1, %v324_v21, %v315_v22  ;;  %v334_v24 = vsel %vm330_vm2, %v315_v22, %v574_v35 }
 0x168   :  { %342 = vst [vmem:[%s629_s3 + $0x30] sm:$0xff] %v329_v23  ;;  %343 = vst.msk [vmem:[%s629_s3 + $0x38] sm:$0xff] %vm336_vm3, %v334_v24 }

</bundles_post_ra>
